<compile_context>
chip_gen: v6e
topology: v6e:2x2x1
jax: 0.10.0
libtpu: 0.0.40
codegen_flags: <defaults>
</compile_context>

<pallas_src>
import numpy as np

import jax
import jax.numpy as jnp
from jax import lax
from jax.experimental import pallas as pl
from jax.experimental.pallas import tpu as pltpu


# ---------------------------------------------------------------------------
# cfg (mirrors the [from, num_layer, func, args] structure of the torch model)
# ---------------------------------------------------------------------------
CFG = {
    "model": [
        # [from, num_layer, func, args]
        [-1, 1, "Conv2d", (4, 8, 3, 1, 1)],    # 0
        [-1, 1, "ReLU", ()],                   # 1  (recorded: routed by 4)
        [-1, 1, "Conv2d", (8, 8, 3, 1, 1)],    # 2
        [-1, 1, "ReLU", ()],                   # 3
        [[-1, 1], 1, "Concat", ()],            # 4  concat(current, layer-1 out)
        [-1, 1, "Conv2d", (16, 8, 1, 1, 0)],   # 5  1x1 fuse conv
    ]
}


# ---------------------------------------------------------------------------
# parameter init + route bookkeeping (mirrors parse_model_cfg)
# ---------------------------------------------------------------------------
def init_params(cfg, key):
    params, routes = [], []
    for f, num_layer, func, args in cfg["model"]:
        if f != -1:
            _f = [f] if isinstance(f, int) else f
            for _pos in _f:
                if _pos == -1:
                    continue
                routes[_pos] = True
        routes.append(False)
        subs = []
        for _ in range(max(num_layer, 1)):
            if func == "Conv2d":
                cin, cout, k, stride, pad = args
                key, wk, bk = jax.random.split(key, 3)
                w = (jax.random.normal(wk, (k, k, cin, cout), jnp.float32)
                     / np.sqrt(float(cin * k * k)))
                b = jax.random.normal(bk, (cout,), jnp.float32) * 0.01
                subs.append({"w": w, "b": b, "stride": stride, "pad": pad})
            else:
                subs.append(None)
        params.append(subs)
    return params, routes


# ---------------------------------------------------------------------------
# plain-JAX reference forward (exactly mirrors torch Model.forward routing)
# ---------------------------------------------------------------------------
def reference_forward(cfg, params, routes, x_nchw):
    x = jnp.transpose(x_nchw, (0, 2, 3, 1))  # NHWC
    record = []
    for (f, _num, func, _args), subs, route in zip(cfg["model"], params, routes):
        if f != -1:
            if isinstance(f, int):
                x = record[f]
            else:
                x = [x if j == -1 else record[j] for j in f]
        for p in subs:
            if func == "Conv2d":
                y = lax.conv_general_dilated(
                    x, p["w"], (p["stride"], p["stride"]),
                    [(p["pad"], p["pad"])] * 2,
                    dimension_numbers=("NHWC", "HWIO", "NHWC"))
                x = y + p["b"]
            elif func == "ReLU":
                x = jnp.maximum(x, 0.0)
            elif func == "Concat":
                x = jnp.concatenate(x, axis=-1)
            else:
                raise ValueError(f"unknown layer func {func}")
        record.append(x if route else None)
    return jnp.transpose(x, (0, 3, 1, 2))  # back to NCHW


# ---------------------------------------------------------------------------
# build-time weight preprocessing for the fused kernel
# ---------------------------------------------------------------------------
def _banded_conv_weight(w, w_out, wp):
    """(KH,KW,Cin,Cout) conv weight -> (KH*Wp*Cin, W*Cout) banded matrix.

    Acts on the (H, KH*Wp*Cin) row-band patch of a zero-padded (Hp, Wp*Cin)
    activation slab and yields a lane-dense (H, W*Cout) output slab.
    """
    w = np.asarray(w, np.float32)
    kh_, kw_, cin, cout = w.shape
    big = np.zeros((kh_ * wp * cin, w_out * cout), np.float32)
    for kh in range(kh_):
        for kw in range(kw_):
            for wo in range(w_out):
                r = kh * wp * cin + (wo + kw) * cin
                c = wo * cout
                big[r:r + cin, c:c + cout] = w[kh, kw]
    return jnp.asarray(big)


def _blockdiag_1x1_weight(w_part, w_out):
    """(Cin, Cout) 1x1-conv weight -> (W*Cin, W*Cout) block-diagonal matrix."""
    return jnp.asarray(np.kron(np.eye(w_out, dtype=np.float32),
                               np.asarray(w_part, np.float32)))


# ---------------------------------------------------------------------------
# fused Pallas forward (entire cfg in one kernel)
# ---------------------------------------------------------------------------
def build_fused_forward(cfg, params, H, W):
    p0 = params[0][0]
    p2 = params[2][0]
    p5 = params[5][0]
    assert p0["stride"] == p2["stride"] == p5["stride"] == 1
    assert p0["pad"] == 1 and p2["pad"] == 1 and p5["pad"] == 0

    KH = p0["w"].shape[0]          # 3
    C0 = p0["w"].shape[2]          # 4  input channels
    C = p0["w"].shape[3]           # 8  conv0/conv2/conv5 output channels
    Hp, Wp = H + 2, W + 2
    WC = W * C                     # 128 : lane-dense slab width
    K0 = KH * Wp * C0              # 216
    K2 = KH * Wp * C               # 432

    w0_big = _banded_conv_weight(p0["w"], W, Wp)          # (K0, WC)
    w2_big = _banded_conv_weight(p2["w"], W, Wp)          # (K2, WC)
    w5 = np.asarray(p5["w"], np.float32).reshape(2 * C, C)
    w5_cur = _blockdiag_1x1_weight(w5[:C], W)             # for layer-3 output
    w5_rt1 = _blockdiag_1x1_weight(w5[C:], W)             # for routed layer-1 out
    b0_row = jnp.tile(p0["b"], W).reshape(1, WC)
    b2_row = jnp.tile(p2["b"], W).reshape(1, WC)
    b5_row = jnp.tile(p5["b"], W).reshape(1, WC)

    def kernel(x_ref, w0_ref, b0_ref, w2_ref, b2_ref,
               w5a_ref, w5b_ref, b5_ref, o_ref):
        xp = x_ref[0]                                       # (Hp, Wp*C0)
        # ---- layers 0+1: 3x3 conv as ONE matmul, bias+ReLU fused epilogue ----
        rows0 = jnp.concatenate([xp[kh:kh + H, :] for kh in range(KH)], axis=-1)
        y1 = jnp.dot(rows0, w0_ref[...], preferred_element_type=jnp.float32)
        y1 = jnp.maximum(y1 + b0_ref[...], 0.0)             # (H, WC)  routed
        # ---- re-pad layer-1 output in-register (never touches HBM) ----
        zc = jnp.zeros((H, C), jnp.float32)
        zr = jnp.zeros((1, Wp * C), jnp.float32)
        y1p = jnp.concatenate(
            [zr, jnp.concatenate([zc, y1, zc], axis=-1), zr], axis=0)  # (Hp, Wp*C)
        # ---- layers 2+3 ----
        rows2 = jnp.concatenate([y1p[kh:kh + H, :] for kh in range(KH)], axis=-1)
        y3 = jnp.dot(rows2, w2_ref[...], preferred_element_type=jnp.float32)
        y3 = jnp.maximum(y3 + b2_ref[...], 0.0)             # (H, WC)
        # ---- layers 4+5: channel concat folded into two block-diag matmuls ----
        out = (jnp.dot(y3, w5a_ref[...], preferred_element_type=jnp.float32)
               + jnp.dot(y1, w5b_ref[...], preferred_element_type=jnp.float32)
               + b5_ref[...])
        o_ref[0] = out.astype(o_ref.dtype)                  # lane-dense (H, 128)

    @jax.jit
    def forward(x_nchw):
        N = x_nchw.shape[0]
        x = jnp.transpose(x_nchw, (0, 2, 3, 1))             # NHWC
        xpad = jnp.pad(x, ((0, 0), (1, 1), (1, 1), (0, 0)))
        xslab = xpad.reshape(N, Hp, Wp * C0)                # (N, 18, 72)
        out = pl.pallas_call(
            kernel,
            out_shape=jax.ShapeDtypeStruct((N, H, WC), jnp.float32),
            grid_spec=pltpu.PrefetchScalarGridSpec(
                num_scalar_prefetch=0,
                grid=(N,),
                in_specs=[
                    pl.BlockSpec((1, Hp, Wp * C0), lambda n: (n, 0, 0)),
                    pl.BlockSpec((K0, WC), lambda n: (0, 0)),
                    pl.BlockSpec((1, WC), lambda n: (0, 0)),
                    pl.BlockSpec((K2, WC), lambda n: (0, 0)),
                    pl.BlockSpec((1, WC), lambda n: (0, 0)),
                    pl.BlockSpec((WC, WC), lambda n: (0, 0)),
                    pl.BlockSpec((WC, WC), lambda n: (0, 0)),
                    pl.BlockSpec((1, WC), lambda n: (0, 0)),
                ],
                out_specs=pl.BlockSpec((1, H, WC), lambda n: (n, 0, 0)),
            ),
            compiler_params=pltpu.CompilerParams(
                dimension_semantics=("parallel",)),
        )(xslab, w0_big, b0_row, w2_big, b2_row, w5_cur, w5_rt1, b5_row)
        y = out.reshape(N, H, W, C)
        return jnp.transpose(y, (0, 3, 1, 2))               # back to NCHW

    return forward


# ---------------------------------------------------------------------------
if __name__ == "__main__":
    N, Cin, H, W = 2, 4, 16, 16
    x = jax.random.normal(jax.random.PRNGKey(0), (N, Cin, H, W), jnp.float32)

    params, routes = init_params(CFG, jax.random.PRNGKey(1))
    forward = build_fused_forward(CFG, params, H, W)

    y = forward(x)
    jax.block_until_ready(y)

    # Cross-check against a plain-JAX forward that mirrors torch Model.forward.
    y_ref = reference_forward(CFG, params, routes, x)
    jax.block_until_ready(y_ref)

    assert y.shape == (N, 8, H, W)
    assert jnp.allclose(y, y_ref, rtol=1e-4, atol=1e-4), "mismatch vs reference"

    print("KERNEL_OK")
</pallas_src>

<mosaic_0001>
module attributes {stable_mosaic.version = 11 : i64} {
  func.func @kernel(%arg0: i32, %arg1: memref<1x18x72xf32, #tpu.memory_space<vmem>>, %arg2: memref<216x128xf32, #tpu.memory_space<vmem>>, %arg3: memref<1x128xf32, #tpu.memory_space<vmem>>, %arg4: memref<432x128xf32, #tpu.memory_space<vmem>>, %arg5: memref<1x128xf32, #tpu.memory_space<vmem>>, %arg6: memref<128x128xf32, #tpu.memory_space<vmem>>, %arg7: memref<128x128xf32, #tpu.memory_space<vmem>>, %arg8: memref<1x128xf32, #tpu.memory_space<vmem>>, %arg9: memref<1x16x128xf32, #tpu.memory_space<vmem>>) attributes {dimension_semantics = [#tpu.dimension_semantics<parallel>], iteration_bounds = array<i64: 2>, scalar_prefetch = 0 : i64, scratch_operands = 0 : i64, tpu.core_type = #tpu.core_type<tc>, window_params = [{transform_indices = @transform_0, window_bounds = array<i64: 1, 18, 72>}, {pipeline_mode = #tpu.pipeline_mode<synchronous>, transform_indices = @transform_1, window_bounds = array<i64: 216, 128>}, {pipeline_mode = #tpu.pipeline_mode<synchronous>, transform_indices = @transform_2, window_bounds = array<i64: 1, 128>}, {pipeline_mode = #tpu.pipeline_mode<synchronous>, transform_indices = @transform_3, window_bounds = array<i64: 432, 128>}, {pipeline_mode = #tpu.pipeline_mode<synchronous>, transform_indices = @transform_4, window_bounds = array<i64: 1, 128>}, {pipeline_mode = #tpu.pipeline_mode<synchronous>, transform_indices = @transform_5, window_bounds = array<i64: 128, 128>}, {pipeline_mode = #tpu.pipeline_mode<synchronous>, transform_indices = @transform_6, window_bounds = array<i64: 128, 128>}, {pipeline_mode = #tpu.pipeline_mode<synchronous>, transform_indices = @transform_7, window_bounds = array<i64: 1, 128>}, {transform_indices = @transform_8, window_bounds = array<i64: 1, 16, 128>}]} {
    %c0 = arith.constant 0 : index
    %c0_0 = arith.constant 0 : index
    %c0_1 = arith.constant 0 : index
    %0 = vector.load %arg1[%c0, %c0_0, %c0_1] : memref<1x18x72xf32, #tpu.memory_space<vmem>>, vector<1x18x72xf32>
    %1 = vector.shape_cast %0 : vector<1x18x72xf32> to vector<18x72xf32>
    %2 = vector.extract_strided_slice %1 {offsets = [0, 0], sizes = [16, 72], strides = [1, 1]} : vector<18x72xf32> to vector<16x72xf32>
    %3 = vector.extract_strided_slice %1 {offsets = [1, 0], sizes = [16, 72], strides = [1, 1]} : vector<18x72xf32> to vector<16x72xf32>
    %4 = vector.extract_strided_slice %1 {offsets = [2, 0], sizes = [16, 72], strides = [1, 1]} : vector<18x72xf32> to vector<16x72xf32>
    %5 = tpu.concatenate %2, %3, %4 in 1 : vector<16x72xf32>, vector<16x72xf32>, vector<16x72xf32> -> vector<16x216xf32>
    %c0_2 = arith.constant 0 : index
    %c0_3 = arith.constant 0 : index
    %6 = vector.load %arg2[%c0_2, %c0_3] : memref<216x128xf32, #tpu.memory_space<vmem>>, vector<216x128xf32>
    %cst = arith.constant dense<0.000000e+00> : vector<16x128xf32>
    %7 = tpu.matmul %5, %6, %cst {dimension_numbers = #tpu.dot_dimension_numbers<[1], [0], [0], [1], [0, 0, 1, 1], [], []>} : vector<16x216xf32>, vector<216x128xf32>, vector<16x128xf32> -> vector<16x128xf32>
    %c0_4 = arith.constant 0 : index
    %c0_5 = arith.constant 0 : index
    %8 = vector.load %arg3[%c0_4, %c0_5] : memref<1x128xf32, #tpu.memory_space<vmem>>, vector<1x128xf32>
    %9 = vector.broadcast %8 : vector<1x128xf32> to vector<16x128xf32>
    %10 = arith.addf %7, %9 : vector<16x128xf32>
    %cst_6 = arith.constant 0.000000e+00 : f32
    %11 = vector.broadcast %cst_6 : f32 to vector<16x128xf32>
    %12 = arith.maximumf %10, %11 : vector<16x128xf32>
    %cst_7 = arith.constant 0.000000e+00 : f32
    %13 = vector.broadcast %cst_7 : f32 to vector<16x8xf32>
    %cst_8 = arith.constant 0.000000e+00 : f32
    %14 = vector.broadcast %cst_8 : f32 to vector<1x144xf32>
    %15 = tpu.concatenate %13, %12, %13 in 1 : vector<16x8xf32>, vector<16x128xf32>, vector<16x8xf32> -> vector<16x144xf32>
    %16 = tpu.concatenate %14, %15, %14 in 0 : vector<1x144xf32>, vector<16x144xf32>, vector<1x144xf32> -> vector<18x144xf32>
    %17 = vector.extract_strided_slice %16 {offsets = [0, 0], sizes = [16, 144], strides = [1, 1]} : vector<18x144xf32> to vector<16x144xf32>
    %18 = vector.extract_strided_slice %16 {offsets = [1, 0], sizes = [16, 144], strides = [1, 1]} : vector<18x144xf32> to vector<16x144xf32>
    %19 = vector.extract_strided_slice %16 {offsets = [2, 0], sizes = [16, 144], strides = [1, 1]} : vector<18x144xf32> to vector<16x144xf32>
    %20 = tpu.concatenate %17, %18, %19 in 1 : vector<16x144xf32>, vector<16x144xf32>, vector<16x144xf32> -> vector<16x432xf32>
    %c0_9 = arith.constant 0 : index
    %c0_10 = arith.constant 0 : index
    %21 = vector.load %arg4[%c0_9, %c0_10] : memref<432x128xf32, #tpu.memory_space<vmem>>, vector<432x128xf32>
    %cst_11 = arith.constant dense<0.000000e+00> : vector<16x128xf32>
    %22 = tpu.matmul %20, %21, %cst_11 {dimension_numbers = #tpu.dot_dimension_numbers<[1], [0], [0], [1], [0, 0, 1, 1], [], []>} : vector<16x432xf32>, vector<432x128xf32>, vector<16x128xf32> -> vector<16x128xf32>
    %c0_12 = arith.constant 0 : index
    %c0_13 = arith.constant 0 : index
    %23 = vector.load %arg5[%c0_12, %c0_13] : memref<1x128xf32, #tpu.memory_space<vmem>>, vector<1x128xf32>
    %24 = vector.broadcast %23 : vector<1x128xf32> to vector<16x128xf32>
    %25 = arith.addf %22, %24 : vector<16x128xf32>
    %cst_14 = arith.constant 0.000000e+00 : f32
    %26 = vector.broadcast %cst_14 : f32 to vector<16x128xf32>
    %27 = arith.maximumf %25, %26 : vector<16x128xf32>
    %c0_15 = arith.constant 0 : index
    %c0_16 = arith.constant 0 : index
    %28 = vector.load %arg6[%c0_15, %c0_16] : memref<128x128xf32, #tpu.memory_space<vmem>>, vector<128x128xf32>
    %cst_17 = arith.constant dense<0.000000e+00> : vector<16x128xf32>
    %29 = tpu.matmul %27, %28, %cst_17 {dimension_numbers = #tpu.dot_dimension_numbers<[1], [0], [0], [1], [0, 0, 1, 1], [], []>} : vector<16x128xf32>, vector<128x128xf32>, vector<16x128xf32> -> vector<16x128xf32>
    %c0_18 = arith.constant 0 : index
    %c0_19 = arith.constant 0 : index
    %30 = vector.load %arg7[%c0_18, %c0_19] : memref<128x128xf32, #tpu.memory_space<vmem>>, vector<128x128xf32>
    %cst_20 = arith.constant dense<0.000000e+00> : vector<16x128xf32>
    %31 = tpu.matmul %12, %30, %cst_20 {dimension_numbers = #tpu.dot_dimension_numbers<[1], [0], [0], [1], [0, 0, 1, 1], [], []>} : vector<16x128xf32>, vector<128x128xf32>, vector<16x128xf32> -> vector<16x128xf32>
    %32 = arith.addf %29, %31 : vector<16x128xf32>
    %c0_21 = arith.constant 0 : index
    %c0_22 = arith.constant 0 : index
    %33 = vector.load %arg8[%c0_21, %c0_22] : memref<1x128xf32, #tpu.memory_space<vmem>>, vector<1x128xf32>
    %34 = vector.broadcast %33 : vector<1x128xf32> to vector<16x128xf32>
    %35 = arith.addf %32, %34 : vector<16x128xf32>
    %c0_23 = arith.constant 0 : index
    %c0_24 = arith.constant 0 : index
    %c0_25 = arith.constant 0 : index
    %36 = vector.load %arg9[%c0_23, %c0_24, %c0_25] : memref<1x16x128xf32, #tpu.memory_space<vmem>>, vector<1x16x128xf32>
    %37 = vector.shape_cast %36 : vector<1x16x128xf32> to vector<16x128xf32>
    %38 = vector.shape_cast %35 : vector<16x128xf32> to vector<1x16x128xf32>
    tpu.vector_store %arg9[%c0_23, %c0_24, %c0_25], %38 {strides = array<i32>} : memref<1x16x128xf32, #tpu.memory_space<vmem>>, vector<1x16x128xf32>,
    return
  }
  func.func @transform_0(%arg0: i32) -> (i32, i32, i32) {
    %c0_i32 = arith.constant 0 : i32
    %c0_i32_0 = arith.constant 0 : i32
    %c0_i32_1 = arith.constant 0 : i32
    return %arg0, %c0_i32, %c0_i32_0 : i32, i32, i32
  }
  func.func @transform_1(%arg0: i32) -> (i32, i32) {
    %c0_i32 = arith.constant 0 : i32
    %c0_i32_0 = arith.constant 0 : i32
    %c0_i32_1 = arith.constant 0 : i32
    return %c0_i32, %c0_i32_0 : i32, i32
  }
  func.func @transform_2(%arg0: i32) -> (i32, i32) {
    %c0_i32 = arith.constant 0 : i32
    %c0_i32_0 = arith.constant 0 : i32
    %c0_i32_1 = arith.constant 0 : i32
    return %c0_i32, %c0_i32_0 : i32, i32
  }
  func.func @transform_3(%arg0: i32) -> (i32, i32) {
    %c0_i32 = arith.constant 0 : i32
    %c0_i32_0 = arith.constant 0 : i32
    %c0_i32_1 = arith.constant 0 : i32
    return %c0_i32, %c0_i32_0 : i32, i32
  }
  func.func @transform_4(%arg0: i32) -> (i32, i32) {
    %c0_i32 = arith.constant 0 : i32
    %c0_i32_0 = arith.constant 0 : i32
    %c0_i32_1 = arith.constant 0 : i32
    return %c0_i32, %c0_i32_0 : i32, i32
  }
  func.func @transform_5(%arg0: i32) -> (i32, i32) {
    %c0_i32 = arith.constant 0 : i32
    %c0_i32_0 = arith.constant 0 : i32
    %c0_i32_1 = arith.constant 0 : i32
    return %c0_i32, %c0_i32_0 : i32, i32
  }
  func.func @transform_6(%arg0: i32) -> (i32, i32) {
    %c0_i32 = arith.constant 0 : i32
    %c0_i32_0 = arith.constant 0 : i32
    %c0_i32_1 = arith.constant 0 : i32
    return %c0_i32, %c0_i32_0 : i32, i32
  }
  func.func @transform_7(%arg0: i32) -> (i32, i32) {
    %c0_i32 = arith.constant 0 : i32
    %c0_i32_0 = arith.constant 0 : i32
    %c0_i32_1 = arith.constant 0 : i32
    return %c0_i32, %c0_i32_0 : i32, i32
  }
  func.func @transform_8(%arg0: i32) -> (i32, i32, i32) {
    %c0_i32 = arith.constant 0 : i32
    %c0_i32_0 = arith.constant 0 : i32
    %c0_i32_1 = arith.constant 0 : i32
    return %arg0, %c0_i32, %c0_i32_0 : i32, i32, i32
  }
}

</mosaic_0001>

<bundles_post_ra>
// kernel: forward.1
= control target key start
LH: loop header
LB: loop body
LE: loop exit
PB: predicated region body
PF: predicated region fallthrough
CT: control target
= control target key end

     0   :  { %13 = vsyncpa [#allocation3], 0  ;;  %s1828_s0 = inlined_call_operand.vmem [shape: f32[2,18,72], index: 0, kind: input, shape index: {}]   ;;  %s1829_s1 = inlined_call_operand.vmem [shape: f32[216,128], index: 1, kind: input, shape index: {}]   ;;  %s1830_s2 = inlined_call_operand.vmem [shape: f32[1,128], index: 2, kind: input, shape index: {}]   ;;  %s1831_s3 = inlined_call_operand.vmem [shape: f32[432,128], index: 3, kind: input, shape index: {}]   ;;  %s1832_s4 = inlined_call_operand.vmem [shape: f32[1,128], index: 4, kind: input, shape index: {}]   ;;  %s1833_s5 = inlined_call_operand.hbm [shape: f32[128,128], index: 5, kind: input, shape index: {}]   ;;  %s1834_s6 = inlined_call_operand.hbm [shape: f32[128,128], index: 6, kind: input, shape index: {}]   ;;  %s1835_s7 = inlined_call_operand.vmem [shape: f32[1,128], index: 7, kind: input, shape index: {}]   ;;  %s1836_s8 = inlined_call_operand.vmem [shape: f32[2,16,128], index: 8, kind: output, shape index: {}]  }
   0x1   :  { %14 = vsyncpa [#allocation5], 0  ;;  %s1399_s27 = smov 0  }
   0x2 LB: > { %s1405_s28 = sadd.s32 4294967295, %s1343_s27   ;;  %p1069_p0 = scmp.ge.s32.totalorder %s1343_s27, 1  ;;  %s1343_s27 = sphi %s1399_s27, %s20_s27  }
   0x3   : > { %p224_p1 = scmp.lt.s32.totalorder %s1343_s27, 3  ;;  %s1345_s29 = smov [#allocation2]  }
   0x4   : > { %s248_s30 = sshll.u32 %s1345_s29, 4  ;;  %p1251_p3 = scmp.eq.s32.totalorder %s1405_s28, 0  ;;  %s249_s30 = int_to_ptr.vmem [resolvable:$true] %s248_s30 }
   0x5   : > { %p1409_p2 = pnand %p1069_p0, %p224_p1  ;;  %s1346_s10 = smov [#allocation4]  }
   0x6   : > { %s261_s11 = sshll.u32 %s1346_s10, 4  ;;  %s1288_s13 = scalar_lea.vmem %s249_s30, 2048  ;;  %s262_s11 = int_to_ptr.vmem [resolvable:$true] %s261_s11 }
   0x7   : > { %p1244_p4 = pneg %p1409_p2  ;;  %p1289_p7 = scmp.ne.s32.totalorder %s249_s30, %s1288_s13 }
   0x8   : > { %p1296_p10 = scmp.lt.s32.totalorder %s249_s30, %s249_s30  ;;  %p1297_p11 = scmp.lt.s32.totalorder %s1288_s13, %s1288_s13 }
   0x9   : > { %p1418_p5 = pnand %p1251_p3, %p1244_p4 }
   0xa   : > { %p1298_p12 = por %p1297_p11, %p1296_p10 }
   0xb   : > { %p1279_p6 = pneg %p1418_p5 }
   0xd   : > { %p1291_p8 = pnand %p1289_p7, %p1279_p6 }
   0xf   : > { %p1292_p9 = pneg %p1291_p8 }
  0x11   : > { %p1299_p13 = pnand %p1298_p12, %p1292_p9 }
  0x13   : > { %1302 = shalt.err (!%p1299_p13)
}
  0x14   : > { %s1347_s14 = smov 128   ;;  %s1348_s15 = smov 8  }
  0x15   : > { %1247 = dma.hbm_to_vmem [thread:$0]  (!%p1418_p5), %s1833_s5, 2048, %s249_s30, [#allocation3], %s1347_s14, %s1347_s14, %s1348_s15  }
  0x16   : > { %s1314_s18 = scalar_lea.vmem %s262_s11, 2048  ;;  %p1322_p7 = scmp.lt.s32.totalorder %s262_s11, %s262_s11 }
  0x17   : > { %p1315_p0 = scmp.ne.s32.totalorder %s262_s11, %s1314_s18  ;;  %p1323_p8 = scmp.lt.s32.totalorder %s1314_s18, %s1314_s18 }
  0x19   : > { %p1317_p1 = pnand %p1315_p0, %p1279_p6  ;;  %p1324_p10 = por %p1323_p8, %p1322_p7 }
  0x1b   : > { %p1318_p4 = pneg %p1317_p1 }
  0x1d   : > { %p1325_p9 = pnand %p1324_p10, %p1318_p4 }
  0x1f   : > { %1328 = shalt.err (!%p1325_p9)
}
  0x20   : > { %1250 = dma.hbm_to_vmem [thread:$0]  (!%p1418_p5), %s1834_s6, 2048, %s262_s11, [#allocation5], %s1347_s14, %s1347_s14, %s1348_s15  }
  0x21   : > { %288 = sbr.rel (%p1409_p2) target bundleno = 1057 (0x421), region = 52 }
  0x26   : > { %1334 = dma.done.wait (%p1251_p3), [#allocation3], 2048  }
  0x27   : > { %1336 = vsyncadd (%p1251_p3), [#allocation3], 4294965248 }
  0x28   : > { %1338 = dma.done.wait (%p1251_p3), [#allocation5], 2048  }
  0x29   : > { %1340 = vsyncadd (%p1251_p3), [#allocation5], 4294965248  ;;  %p326_p6 = scmp.lt.s32.totalorder %s1405_s28, 1  ;;  %v1349_v0 = vmov 0.0   ;;  %vm342_vm0 = vcmask 1046528   ;;  %v387_v8 = vld [vmem:[%s1829_s1 + $0x78] sm:$0xff] }
  0x2a   : > { %413 = vmatprep.subr.mxu0 %v1349_v0  ;;  %vm354_vm1 = vcmask 1045504   ;;  %v386_v11 = vld [vmem:[%s1829_s1 + $0x70] sm:$0xff]  ;;  %s1350_s9 = smov 72   ;;  %v385_v14 = vld [vmem:[%s1829_s1 + $0x68] sm:$0xff]  ;;  %v384_v17 = vld [vmem:[%s1829_s1 + $0x60] sm:$0xff]  ;;  %s1351_s14 = smov 16  }
  0x2b   : > { %s1840_s28 = smov (!%p326_p6, %s1405_s28), 1  ;;  %414 = vmatpush1.msra.mxu0 %v387_v8  ;;  %v383_v18 = vld [vmem:[%s1829_s1 + $0x58] sm:$0xff]  ;;  %v382_v19 = vld [vmem:[%s1829_s1 + $0x50] sm:$0xff]  ;;  %v381_v20 = vld [vmem:[%s1829_s1 + $0x48] sm:$0xff]  ;;  %vm369_vm2 = vcmask 130048   ;;  %vm406_vm3 = vcmask 719872  }
  0x2c   : > { %s1235_s21 = smul.u32 24, %s1840_s28  ;;  %415 = vmatprep.subr.mxu0 %v1349_v0  ;;  %v380_v21 = vld [vmem:[%s1829_s1 + $0x40] sm:$0xff]  ;;  %v379_v22 = vld [vmem:[%s1829_s1 + $0x38] sm:$0xff]  ;;  %v378_v23 = vld [vmem:[%s1829_s1 + $0x30] sm:$0xff]  ;;  %vm366_vm4 = vcmask 588800   ;;  %s1352_s25 = smov 8  }
  0x2d   : > { %416 = vmatpush1.msra.mxu0 %v386_v11  ;;  %v377_v24 = vld [vmem:[%s1829_s1 + $0x28] sm:$0xff]  ;;  %v376_v25 = vld [vmem:[%s1829_s1 + $0x20] sm:$0xff]  ;;  %v375_v26 = vld [vmem:[%s1829_s1 + $0x18] sm:$0xff]  ;;  %vm498_vm5 = vcmask 64512   ;;  %vm507_vm6 = vcmask 1040384   ;;  %s1353_s13 = smov 32  }
  0x2e   : > { %s330_s24 = scalar_lea.vmem %s1828_s0, %s1235_s21  ;;  %417 = vmatprep.subr.mxu0 %v1349_v0  ;;  %v374_v27 = vld [vmem:[%s1829_s1 + $0x10] sm:$0xff]  ;;  %v373_v28 = vld [vmem:[%s1829_s1 + $0x8] sm:$0xff]  ;;  %v372_v29 = vld [vmem:[%s1829_s1] sm:$0xff]  ;;  %vm570_vm8 = vcmask 261120   ;;  %vm640_vm9 = vcmask 392192   ;;  %s1090_s20 = sshll.u32 %s1840_s28, 4 }
  0x2f   : > { %v1459_v1 = vld [vmem:[%s330_s24 + $0x8] sm:$0xff]  ;;  %v338_v2 = vld [vmem:[%s330_s24 + $0x10] sm:$0x3]  ;;  %v1461_v3 = vld [vmem:[%s330_s24] sm:$0xff]  ;;  %418 = vmatpush1.msra.mxu0 %v385_v14 }
  0x30   : > { %v344_v4 = vrot.slane %v1459_v1, 1  ;;  %v346_v5 = vrot.slane %v338_v2, 1  ;;  %v343_v6 = vrot.slane %v1461_v3, 1  ;;  %v356_v7 = vrot.slane %v1459_v1, 2  ;;  %419 = vmatprep.subr.mxu0 %v1349_v0  ;;  %v398_v30 = vld [vmem:[%s1829_s1 + $0xd0] sm:$0xff]  ;;  %v397_v31 = vld [vmem:[%s1829_s1 + $0xc8] sm:$0xff]  ;;  %vm1083_vm7 = vmneg %vm507_vm6 }
  0x31   : > { %v358_v9 = vrot.slane %v338_v2, 2  ;;  %v355_v10 = vrot.slane %v1461_v3, 2  ;;  %420 = vmatpush1.msra.mxu0 %v384_v17  ;;  %v396_v32 = vld [vmem:[%s1829_s1 + $0xc0] sm:$0xff]  ;;  %v395_v33 = vld [vmem:[%s1829_s1 + $0xb8] sm:$0xff]  ;;  %v394_v34 = vld [vmem:[%s1829_s1 + $0xb0] sm:$0xff] }
  0x32   : > { %v347_v12 = vsel %vm342_vm0, %v344_v4, %v346_v5  ;;  %v345_v13 = vsel %vm342_vm0, %v343_v6, %v344_v4  ;;  %421 = vmatprep.subr.mxu0 %v1349_v0  ;;  %v393_v35 = vld [vmem:[%s1829_s1 + $0xa8] sm:$0xff]  ;;  %v392_v36 = vld [vmem:[%s1829_s1 + $0xa0] sm:$0xff]  ;;  %v391_v37 = vld [vmem:[%s1829_s1 + $0x98] sm:$0xff] }
  0x33   : > { %350 = vrot.lane.b32.xlu1 %v347_v12, %s1350_s9  ;;  %348 = vrot.lane.b32.xlu0 %v345_v13, %s1350_s9  ;;  %v359_v15 = vsel %vm354_vm1, %v356_v7, %v358_v9  ;;  %v357_v16 = vsel %vm354_vm1, %v355_v10, %v356_v7  ;;  %v390_v38 = vld [vmem:[%s1829_s1 + $0x90] sm:$0xff]  ;;  %v389_v39 = vld [vmem:[%s1829_s1 + $0x88] sm:$0xff]  ;;  %v828_v41 = vld [vmem:[#allocation4 + $0x78] sm:$0xff] }
  0x34   : > { %422 = vmatpush1.msra.mxu0 %v383_v18  ;;  %v388_v40 = vld [vmem:[%s1829_s1 + $0x80] sm:$0xff]  ;;  %v827_v48 = vld [vmem:[#allocation4 + $0x70] sm:$0xff]  ;;  %v826_v50 = vld [vmem:[#allocation4 + $0x68] sm:$0xff] }
  0x35   : > { %423 = vmatprep.subr.mxu0 %v1349_v0  ;;  %v825_v52 = vld [vmem:[#allocation4 + $0x60] sm:$0xff]  ;;  %v824_v53 = vld [vmem:[#allocation4 + $0x58] sm:$0xff]  ;;  %v823_v54 = vld [vmem:[#allocation4 + $0x50] sm:$0xff] }
  0x36   : > { %424 = vmatpush1.msra.mxu0 %v382_v19  ;;  %v822_v55 = vld [vmem:[#allocation4 + $0x48] sm:$0xff]  ;;  %v821_v56 = vld [vmem:[#allocation4 + $0x40] sm:$0xff]  ;;  %v820_v57 = vld [vmem:[#allocation4 + $0x38] sm:$0xff] }
  0x37   : > { %362 = vrot.lane.b32.xlu1 %v359_v15, %s1351_s14  ;;  %360 = vrot.lane.b32.xlu0 %v357_v16, %s1351_s14  ;;  %v819_v58 = vld [vmem:[#allocation4 + $0x30] sm:$0xff]  ;;  %v818_v59 = vld [vmem:[#allocation4 + $0x28] sm:$0xff]  ;;  %v817_v60 = vld [vmem:[#allocation4 + $0x20] sm:$0xff] }
  0x38   : > { %425 = vmatprep.subr.mxu0 %v1349_v0  ;;  %v816_v61 = vld [vmem:[#allocation4 + $0x18] sm:$0xff]  ;;  %v815_v62 = vld [vmem:[#allocation4 + $0x10] sm:$0xff]  ;;  %v814_v63 = vld [vmem:[#allocation4 + $0x8] sm:$0xff] }
  0x39   : > { %426 = vmatpush1.msra.mxu0 %v381_v20  ;;  %v1079_v2 = vld [vmem:[%s1830_s2] ss:$0 sm:$0xff]  ;;  %v610_v11 = vld [vmem:[%s1831_s3 + $0xf8] sm:$0xff]  ;;  %v609_v13 = vld [vmem:[%s1831_s3 + $0xf0] sm:$0xff] }
  0x3a   : > { %427 = vmatprep.subr.mxu0 %v1349_v0  ;;  %v594_v12 = vld [vmem:[%s1831_s3 + $0x78] sm:$0xff]  ;;  %1091 = vmatprep.subr.mxu1 %v610_v11  ;;  %v593_v14 = vld [vmem:[%s1831_s3 + $0x70] sm:$0xff]  ;;  %v608_v15 = vld [vmem:[%s1831_s3 + $0xe8] sm:$0xff] }
  0x3b   : > { %428 = vmatpush1.msra.mxu0 %v380_v21  ;;  %1092 = vmatpush3.msra.mxu1 %v594_v12  ;;  %v592_v16 = vld [vmem:[%s1831_s3 + $0x68] sm:$0xff]  ;;  %v607_v17 = vld [vmem:[%s1831_s3 + $0xe0] sm:$0xff]  ;;  %v606_v19 = vld [vmem:[%s1831_s3 + $0xd8] sm:$0xff] }
  0x3c   : > { %429 = vmatprep.subr.mxu0 %v1349_v0  ;;  %1093 = vmatprep.subr.mxu1 %v609_v13  ;;  %v591_v18 = vld [vmem:[%s1831_s3 + $0x60] sm:$0xff]  ;;  %v590_v20 = vld [vmem:[%s1831_s3 + $0x58] sm:$0xff]  ;;  %v605_v21 = vld [vmem:[%s1831_s3 + $0xd0] sm:$0xff] }
  0x3d   : > { %430 = vmatpush1.msra.mxu0 %v379_v22  ;;  %1094 = vmatpush3.msra.mxu1 %v593_v14  ;;  %v589_v22 = vld [vmem:[%s1831_s3 + $0x50] sm:$0xff] }
  0x3e   : > { %431 = vmatprep.subr.mxu0 %v1349_v0  ;;  %1095 = vmatprep.subr.mxu1 %v608_v15 }
  0x3f   : > { %432 = vmatpush1.msra.mxu0 %v378_v23  ;;  %1096 = vmatpush3.msra.mxu1 %v592_v16  ;;  %v604_v23 = vld [vmem:[%s1831_s3 + $0xc8] sm:$0xff] }
  0x40   : > { %433 = vmatprep.subr.mxu0 %v1349_v0  ;;  %1097 = vmatprep.subr.mxu1 %v607_v17 }
  0x41   : > { %434 = vmatpush1.msra.mxu0 %v377_v24  ;;  %1098 = vmatpush3.msra.mxu1 %v591_v18  ;;  %v588_v24 = vld [vmem:[%s1831_s3 + $0x48] sm:$0xff] }
  0x42   : > { %435 = vmatprep.subr.mxu0 %v1349_v0  ;;  %1099 = vmatprep.subr.mxu1 %v606_v19  ;;  %v626_v19 = vld [vmem:[%s1831_s3 + $0x178] sm:$0xff] }
  0x43   : > { %436 = vmatpush1.msra.mxu0 %v376_v25  ;;  %1100 = vmatpush3.msra.mxu1 %v590_v20  ;;  %v603_v25 = vld [vmem:[%s1831_s3 + $0xc0] sm:$0xff] }
  0x44   : > { %437 = vmatprep.subr.mxu0 %v1349_v0  ;;  %1101 = vmatprep.subr.mxu1 %v605_v21 }
  0x45   : > { %438 = vmatpush1.msra.mxu0 %v375_v26  ;;  %1102 = vmatpush3.msra.mxu1 %v589_v22  ;;  %v587_v26 = vld [vmem:[%s1831_s3 + $0x40] sm:$0xff]  ;;  %v625_v22 = vld [vmem:[%s1831_s3 + $0x170] sm:$0xff] }
  0x46   : > { %439 = vmatprep.subr.mxu0 %v1349_v0  ;;  %1103 = vmatprep.subr.mxu1 %v604_v23 }
  0x47   : > { %440 = vmatpush1.msra.mxu0 %v374_v27  ;;  %1104 = vmatpush3.msra.mxu1 %v588_v24  ;;  %v602_v27 = vld [vmem:[%s1831_s3 + $0xb8] sm:$0xff]  ;;  %v624_v24 = vld [vmem:[%s1831_s3 + $0x168] sm:$0xff] }
  0x48   : > { %441 = vmatprep.subr.mxu0 %v1349_v0  ;;  %1105 = vmatprep.subr.mxu1 %v603_v25 }
  0x49   : > { %442 = vmatpush1.msra.mxu0 %v373_v28  ;;  %v586_v28 = vld [vmem:[%s1831_s3 + $0x38] sm:$0xff]  ;;  %1106 = vmatpush3.msra.mxu1 %v587_v26 }
  0x4a   : > { %443 = vmatprep.subr.mxu0 %v1349_v0  ;;  %1107 = vmatprep.subr.mxu1 %v602_v27 }
  0x4b   : > { %444 = vmatpush1.msra.mxu0 %v372_v29  ;;  %v601_v29 = vld [vmem:[%s1831_s3 + $0xb0] sm:$0xff]  ;;  %1108 = vmatpush3.msra.mxu1 %v586_v28  ;;  %v623_v28 = vld [vmem:[%s1831_s3 + $0x160] sm:$0xff] }
  0x4c   : > { %455 = vmatprep.subr.mxu0 %v1349_v0  ;;  %1109 = vmatprep.subr.mxu1 %v601_v29  ;;  %v622_v29 = vld [vmem:[%s1831_s3 + $0x158] sm:$0xff] }
  0x4d   : > { %456 = vmatpush2.msra.mxu0 %v398_v30  ;;  %v585_v30 = vld [vmem:[%s1831_s3 + $0x30] sm:$0xff] }
  0x4e   : > { %457 = vmatprep.subr.mxu0 %v1349_v0  ;;  %1110 = vmatpush3.msra.mxu1 %v585_v30  ;;  %v621_v30 = vld [vmem:[%s1831_s3 + $0x150] sm:$0xff] }
  0x4f   : > { %458 = vmatpush2.msra.mxu0 %v397_v31  ;;  %v600_v31 = vld [vmem:[%s1831_s3 + $0xa8] sm:$0xff] }
  0x50   : > { %459 = vmatprep.subr.mxu0 %v1349_v0  ;;  %1111 = vmatprep.subr.mxu1 %v600_v31  ;;  %v620_v31 = vld [vmem:[%s1831_s3 + $0x148] sm:$0xff] }
  0x51   : > { %460 = vmatpush2.msra.mxu0 %v396_v32  ;;  %v584_v32 = vld [vmem:[%s1831_s3 + $0x28] sm:$0xff] }
  0x52   : > { %461 = vmatprep.subr.mxu0 %v1349_v0  ;;  %1112 = vmatpush3.msra.mxu1 %v584_v32  ;;  %v619_v32 = vld [vmem:[%s1831_s3 + $0x140] sm:$0xff] }
  0x53   : > { %462 = vmatpush2.msra.mxu0 %v395_v33  ;;  %v599_v33 = vld [vmem:[%s1831_s3 + $0xa0] sm:$0xff] }
  0x54   : > { %463 = vmatprep.subr.mxu0 %v1349_v0  ;;  %1113 = vmatprep.subr.mxu1 %v599_v33  ;;  %v618_v33 = vld [vmem:[%s1831_s3 + $0x138] sm:$0xff] }
  0x55   : > { %464 = vmatpush2.msra.mxu0 %v394_v34  ;;  %v583_v34 = vld [vmem:[%s1831_s3 + $0x20] sm:$0xff] }
  0x56   : > { %465 = vmatprep.subr.mxu0 %v1349_v0  ;;  %1114 = vmatpush3.msra.mxu1 %v583_v34  ;;  %v617_v34 = vld [vmem:[%s1831_s3 + $0x130] sm:$0xff] }
  0x57   : > { %466 = vmatpush2.msra.mxu0 %v393_v35  ;;  %v598_v35 = vld [vmem:[%s1831_s3 + $0x98] sm:$0xff] }
  0x58   : > { %467 = vmatprep.subr.mxu0 %v1349_v0  ;;  %1115 = vmatprep.subr.mxu1 %v598_v35  ;;  %v616_v35 = vld [vmem:[%s1831_s3 + $0x128] sm:$0xff] }
  0x59   : > { %468 = vmatpush2.msra.mxu0 %v392_v36  ;;  %v582_v36 = vld [vmem:[%s1831_s3 + $0x18] sm:$0xff] }
  0x5a   : > { %469 = vmatprep.subr.mxu0 %v1349_v0  ;;  %1116 = vmatpush3.msra.mxu1 %v582_v36  ;;  %v615_v36 = vld [vmem:[%s1831_s3 + $0x120] sm:$0xff] }
  0x5b   : > { %470 = vmatpush2.msra.mxu0 %v391_v37  ;;  %v597_v37 = vld [vmem:[%s1831_s3 + $0x90] sm:$0xff] }
  0x5c   : > { %471 = vmatprep.subr.mxu0 %v1349_v0  ;;  %1117 = vmatprep.subr.mxu1 %v597_v37  ;;  %v614_v37 = vld [vmem:[%s1831_s3 + $0x118] sm:$0xff] }
  0x5d   : > { %472 = vmatpush2.msra.mxu0 %v390_v38  ;;  %v581_v38 = vld [vmem:[%s1831_s3 + $0x10] sm:$0xff] }
  0x5e   : > { %473 = vmatprep.subr.mxu0 %v1349_v0  ;;  %1118 = vmatpush3.msra.mxu1 %v581_v38  ;;  %v613_v38 = vld [vmem:[%s1831_s3 + $0x110] sm:$0xff] }
  0x5f   : > { %474 = vmatpush2.msra.mxu0 %v389_v39  ;;  %v596_v39 = vld [vmem:[%s1831_s3 + $0x88] sm:$0xff] }
  0x60   : > { %475 = vmatprep.subr.mxu0 %v1349_v0  ;;  %1119 = vmatprep.subr.mxu1 %v596_v39  ;;  %v612_v39 = vld [vmem:[%s1831_s3 + $0x108] sm:$0xff] }
  0x61   : > { %476 = vmatpush2.msra.mxu0 %v388_v40  ;;  %v580_v40 = vld [vmem:[%s1831_s3 + $0x8] sm:$0xff] }
  0x62   : > { %1165 = vmatprep.subr.mxu0 %v828_v41  ;;  %1120 = vmatpush3.msra.mxu1 %v580_v40  ;;  %v611_v40 = vld [vmem:[%s1831_s3 + $0x100] sm:$0xff] }
  0xa5   : > { %v351_v42 = vpop.permute.xlu1 %350  ;;  %v349_v43 = vpop.permute.xlu0 %348 }
  0xa6   : > { %v367_v47 = vsel %vm366_vm4, %v1461_v3, %v349_v43  ;;  %v368_v51 = vsel %vm366_vm4, %v1459_v1, %v351_v42  ;;  %v813_v1 = vld [vmem:[#allocation4] sm:$0xff] }
  0xa9   : > { %v363_v44 = vpop.permute.xlu1 %362  ;;  %v361_v45 = vpop.permute.xlu0 %360 }
  0xaa   : > { %v370_v46 = vsel %vm369_vm2, %v349_v43, %v361_v45  ;;  %v371_v49 = vsel %vm369_vm2, %v351_v42, %v363_v44  ;;  %v579_v42 = vld [vmem:[%s1831_s3] sm:$0xff] }
  0xab   : > { %1080 = vmatprep.mubr.msk.f32.mxu0 %vm406_vm3, %v370_v46 }
  0xac   : > { %478 = vmatmul.mubr.f32.vlgmr.msra.gmra.mxu0 %v367_v47 }
  0xad   : > { %1081 = vmatprep.mubr.msk.f32.mxu0 %vm406_vm3, %v371_v49  ;;  %1166 = vmatpush3.msra.mxu0 %v828_v41  ;;  %v595_v41 = vld [vmem:[%s1831_s3 + $0x80] sm:$0xff] }
  0xae   : > { %1167 = vmatprep.subr.mxu0 %v827_v48  ;;  %1121 = vmatprep.subr.mxu1 %v595_v41  ;;  %v632_v41 = vld [vmem:[%s1831_s3 + $0x1a8] sm:$0xff] }
  0xaf   : > { %1168 = vmatpush3.msra.mxu0 %v827_v48  ;;  %1122 = vmatpush3.msra.mxu1 %v579_v42  ;;  %v631_v42 = vld [vmem:[%s1831_s3 + $0x1a0] sm:$0xff] }
  0xb0   : > { %483 = vmatmul.mubr.f32.gmra.mxu0 %v368_v51  ;;  %1169 = vmatprep.subr.mxu0 %v826_v50 }
  0xb1   : > { %1170 = vmatpush3.msra.mxu0 %v826_v50  ;;  %720 = vmatprep.subr.mxu1 %v1349_v0 }
  0xb2   : > { %1171 = vmatprep.subr.mxu0 %v825_v52 }
  0xb3   : > { %1172 = vmatpush3.msra.mxu0 %v825_v52 }
  0xb4   : > { %1173 = vmatprep.subr.mxu0 %v824_v53 }
  0xb5   : > { %1174 = vmatpush3.msra.mxu0 %v824_v53 }
  0xb6   : > { %1175 = vmatprep.subr.mxu0 %v823_v54 }
  0xb7   : > { %1176 = vmatpush3.msra.mxu0 %v823_v54 }
  0xb8   : > { %1177 = vmatprep.subr.mxu0 %v822_v55 }
  0xb9   : > { %1178 = vmatpush3.msra.mxu0 %v822_v55 }
  0xba   : > { %1179 = vmatprep.subr.mxu0 %v821_v56 }
  0xbb   : > { %1180 = vmatpush3.msra.mxu0 %v821_v56 }
  0xbc   : > { %1181 = vmatprep.subr.mxu0 %v820_v57 }
  0xbd   : > { %1182 = vmatpush3.msra.mxu0 %v820_v57 }
  0xbe   : > { %1183 = vmatprep.subr.mxu0 %v819_v58 }
  0xbf   : > { %1184 = vmatpush3.msra.mxu0 %v819_v58 }
  0xc0   : > { %1185 = vmatprep.subr.mxu0 %v818_v59 }
  0xc1   : > { %1186 = vmatpush3.msra.mxu0 %v818_v59 }
  0xc2   : > { %1187 = vmatprep.subr.mxu0 %v817_v60 }
  0xc3   : > { %1188 = vmatpush3.msra.mxu0 %v817_v60 }
  0xc4   : > { %1189 = vmatprep.subr.mxu0 %v816_v61 }
  0xc5   : > { %1190 = vmatpush3.msra.mxu0 %v816_v61 }
  0xc6   : > { %1191 = vmatprep.subr.mxu0 %v815_v62 }
  0xc7   : > { %1192 = vmatpush3.msra.mxu0 %v815_v62 }
  0xc8   : > { %1193 = vmatprep.subr.mxu0 %v814_v63 }
  0xc9   : > { %1194 = vmatpush3.msra.mxu0 %v814_v63 }
  0xca   : > { %1195 = vmatprep.subr.mxu0 %v813_v1 }
  0xcb   : > { %1196 = vmatpush3.msra.mxu0 %v813_v1 }
 0x16c   : > { %v479_v3 = vpop.f32.mrf.mxu0 }
 0x16d   : > { %v480_v4 = vadd.f32 %v1079_v2, %v479_v3 }
 0x16e   : > { %v481_v5 = vpop.f32.mrf.mxu0 }
 0x16f   : > { %v488_v6 = vmax.f32 %v480_v4, 0.0 }
 0x170   : > { %v484_v7 = vpop.f32.mrf.mxu0 }
 0x171   : > { %v485_v8 = vadd.f32 %v1079_v2, %v484_v7  ;;  %492 = vrot.lane.b32.xlu0 %v488_v6, %s1352_s25  ;;  %1197 = vmatprep.mubr.f32.mxu0 %v488_v6 }
 0x172   : > { %v486_v9 = vpop.f32.mrf.mxu0 }
 0x173   : > { %v489_v10 = vmax.f32 %v485_v8, 0.0 }
 0x175   : > { %494 = vrot.lane.b32.xlu1 %v489_v10, %s1352_s25  ;;  %1198 = vmatmul.mubr.f32.vlgmr.msra.gmra.mxu0 %v489_v10  ;;  %s335_s25 = scalar_lea.vmem %s1836_s8, %s1090_s20 }
 0x1e3   : > { %v493_v43 = vpop.permute.xlu0 %492 }
 0x1e4   : > { %v499_v44 = vsel %vm498_vm5, 0.0, %v493_v43  ;;  %v501_v45 = vsel %vm498_vm5, %v493_v43, 0.0  ;;  %v630_v43 = vld [vmem:[%s1831_s3 + $0x198] sm:$0xff] }
 0x1e5   : > { %v509_v46 = vrot.slane %v501_v45, 7  ;;  %v508_v47 = vrot.slane %v499_v44, 7 }
 0x1e7   : > { %v495_v48 = vpop.permute.xlu1 %494  ;;  %v521_v51 = vsel %vm507_vm6, 0.0, %v509_v46  ;;  %v520_v54 = vsel %vm507_vm6, 0.0, %v508_v47 }
 0x1e8   : > { %v500_v49 = vsel %vm498_vm5, 0.0, %v495_v48  ;;  %v502_v50 = vsel %vm498_vm5, %v495_v48, 0.0  ;;  %v531_v58 = vrot.slane %v521_v51, 1  ;;  %v528_v61 = vrot.slane %v520_v54, 1 }
 0x1e9   : > { %v510_v52 = vrot.slane %v500_v49, 7  ;;  %v512_v53 = vrot.slane %v502_v50, 7  ;;  %v552_v6 = vrot.slane %v520_v54, 2  ;;  %v555_v10 = vrot.slane %v521_v51, 2  ;;  %v627_v49 = vld [vmem:[%s1831_s3 + $0x180] sm:$0xff] }
 0x1eb   : > { %v511_v55 = vsel %vm507_vm6, %v508_v47, %v510_v52  ;;  %v513_v56 = vsel %vm507_vm6, %v509_v46, %v512_v53  ;;  %v522_v57 = vsel %vm507_vm6, %v510_v52, 0.0  ;;  %v523_v4 = vsel %vm507_vm6, %v512_v53, 0.0  ;;  %v629_v46 = vld [vmem:[%s1831_s3 + $0x190] sm:$0xff] }
 0x1ec   : > { %v532_v59 = vrot.slane %v513_v56, 1  ;;  %v534_v60 = vrot.slane %v522_v57, 1  ;;  %v529_v62 = vrot.slane %v511_v55, 1  ;;  %v553_v3 = vrot.slane %v511_v55, 2 }
 0x1ed   : > { %v556_v7 = vrot.slane %v513_v56, 2  ;;  %v536_v8 = vrot.slane %v523_v4, 1  ;;  %v558_v11 = vrot.slane %v522_v57, 2  ;;  %v560_v13 = vrot.slane %v523_v4, 2  ;;  %v811_v57 = vld [vmem:[#allocation2 + $0x70] sm:$0xff]  ;;  %v800_v4 = vld [vmem:[#allocation2 + $0x18] sm:$0xff] }
 0x1ee   : > { %v533_v63 = vsel %vm342_vm0, %v531_v58, %v532_v59  ;;  %v530_v1 = vsel %vm342_vm0, %v528_v61, %v529_v62  ;;  %v535_v2 = vsel %vm342_vm0, %v529_v62, %v534_v60  ;;  %v554_v9 = vsel %vm354_vm1, %v552_v6, %v553_v3  ;;  %v809_v58 = vld [vmem:[#allocation2 + $0x60] sm:$0xff]  ;;  %v807_v60 = vld [vmem:[#allocation2 + $0x50] sm:$0xff]  ;;  %v806_v61 = vld [vmem:[#allocation2 + $0x48] sm:$0xff] }
 0x1ef   : > { %538 = vrot.lane.b32.xlu0 %v530_v1, %s1351_s14  ;;  %v1272_v5 = vpack.i.bf16 %v533_v63, %v535_v2  ;;  %v557_v12 = vsel %vm354_vm1, %v555_v10, %v556_v7  ;;  %v537_v14 = vsel %vm342_vm0, %v532_v59, %v536_v8  ;;  %v559_v15 = vsel %vm354_vm1, %v553_v3, %v558_v11  ;;  %v808_v59 = vld [vmem:[#allocation2 + $0x58] sm:$0xff]  ;;  %v805_v62 = vld [vmem:[#allocation2 + $0x40] sm:$0xff]  ;;  %v803_v1 = vld [vmem:[#allocation2 + $0x30] sm:$0xff] }
 0x1f0   : > { %v561_v16 = vsel %vm354_vm1, %v556_v7, %v560_v13  ;;  %v804_v63 = vld [vmem:[#allocation2 + $0x38] sm:$0xff]  ;;  %v802_v2 = vld [vmem:[#allocation2 + $0x28] sm:$0xff]  ;;  %v801_v3 = vld [vmem:[#allocation2 + $0x20] sm:$0xff] }
 0x1f1   : > { %1273 = vrot.lane.b32.xlu1 %v1272_v5, %s1351_s14  ;;  %v799_v5 = vld [vmem:[#allocation2 + $0x10] sm:$0xff]  ;;  %v798_v6 = vld [vmem:[#allocation2 + $0x8] sm:$0xff]  ;;  %v797_v7 = vld [vmem:[#allocation2] sm:$0xff] }
 0x1f2   : > { %v1082_v13 = vld [vmem:[%s1832_s4] ss:$0 sm:$0xff] }
 0x1f3   : > { %562 = vrot.lane.b32.xlu0 %v554_v9, %s1353_s13 }
 0x1f5   : > { %564 = vrot.lane.b32.xlu1 %v557_v12, %s1353_s13 }
 0x1f7   : > { %544 = vrot.lane.b32.xlu0 %v537_v14, %s1351_s14 }
 0x1f9   : > { %566 = vrot.lane.b32.xlu1 %v559_v15, %s1353_s13 }
 0x1fb   : > { %568 = vrot.lane.b32.xlu0 %v561_v16, %s1353_s13 }
 0x261   : > { %v1701_v17 = vpop.permute.xlu0 %538 }
 0x262   : > { %v575_v18 = vsel %vm369_vm2, %v521_v51, %v1701_v17 }
 0x263   : > { %v1709_v20 = vpop.permute.xlu1 %1273  ;;  %709 = vmatprep.mubr.f32.mxu1 %v575_v18 }
 0x264   : > { %v1275_v21 = vunpack.i.l.bf16 %v1709_v20  ;;  %1084 = vmatmul.mubr.msk.f32.vlgmr.msra.gmra.mxu1 %vm1083_vm7, %v508_v47  ;;  %v1276_v45 = vunpack.i.h.bf16 %v1709_v20  ;;  %v628_v47 = vld [vmem:[%s1831_s3 + $0x188] sm:$0xff] }
 0x265   : > { %721 = vmatpush1.msra.mxu1 %v626_v19  ;;  %v1722_v25 = vpop.permute.xlu0 %562 }
 0x266   : > { %722 = vmatprep.subr.mxu1 %v1349_v0  ;;  %v576_v23 = vsel %vm369_vm2, %v513_v56, %v1275_v21  ;;  %v546_v48 = vsel %vm369_vm2, %v1701_v17, %v1276_v45  ;;  %v812_v56 = vld [vmem:[#allocation2 + $0x78] sm:$0xff] }
 0x267   : > { %723 = vmatpush1.msra.mxu1 %v625_v22  ;;  %v565_v26 = vpop.permute.xlu1 %564  ;;  %714 = vmatprep.mubr.f32.mxu1 %v576_v23  ;;  %v577_v51 = vsel %vm570_vm8, %v546_v48, %v1722_v25 }
 0x268   : > { %v571_v27 = vsel %vm570_vm8, %v1722_v25, %v565_v26  ;;  %724 = vmatprep.subr.mxu1 %v1349_v0  ;;  %715 = vmatmul.mubr.f32.gmra.mxu1 %v511_v55  ;;  %v1199_v25 = vpop.f32.mrf.mxu0 }
 0x269   : > { %725 = vmatpush1.msra.mxu1 %v624_v24  ;;  %1085 = vmatprep.mubr.msk.f32.mxu1 %vm640_vm9, %v571_v27  ;;  %v545_v44 = vpop.permute.xlu0 %544  ;;  %v1087_v27 = vld [vmem:[%s1835_s7] ss:$0 sm:$0xff] }
 0x26a   : > { %726 = vmatprep.subr.mxu1 %v1349_v0  ;;  %v547_v53 = vsel %vm369_vm2, %v1275_v21, %v545_v44 }
 0x26b   : > { %727 = vmatpush1.msra.mxu1 %v623_v28  ;;  %v567_v52 = vpop.permute.xlu1 %566 }
 0x26c   : > { %728 = vmatprep.subr.mxu1 %v1349_v0  ;;  %v578_v55 = vsel %vm570_vm8, %v547_v53, %v567_v52 }
 0x26d   : > { %729 = vmatpush1.msra.mxu1 %v622_v29  ;;  %v569_v50 = vpop.permute.xlu0 %568  ;;  %v895_v29 = vpop.f32.mrf.mxu0 }
 0x26e   : > { %730 = vmatprep.subr.mxu1 %v1349_v0  ;;  %v572_v54 = vsel %vm570_vm8, %v567_v52, %v569_v50 }
 0x26f   : > { %731 = vmatpush1.msra.mxu1 %v621_v30 }
 0x270   : > { %732 = vmatprep.subr.mxu1 %v1349_v0 }
 0x271   : > { %733 = vmatpush1.msra.mxu1 %v620_v31 }
 0x272   : > { %734 = vmatprep.subr.mxu1 %v1349_v0 }
 0x273   : > { %735 = vmatpush1.msra.mxu1 %v619_v32 }
 0x274   : > { %736 = vmatprep.subr.mxu1 %v1349_v0 }
 0x275   : > { %737 = vmatpush1.msra.mxu1 %v618_v33 }
 0x276   : > { %738 = vmatprep.subr.mxu1 %v1349_v0 }
 0x277   : > { %739 = vmatpush1.msra.mxu1 %v617_v34 }
 0x278   : > { %740 = vmatprep.subr.mxu1 %v1349_v0 }
 0x279   : > { %741 = vmatpush1.msra.mxu1 %v616_v35 }
 0x27a   : > { %742 = vmatprep.subr.mxu1 %v1349_v0 }
 0x27b   : > { %743 = vmatpush1.msra.mxu1 %v615_v36 }
 0x27c   : > { %744 = vmatprep.subr.mxu1 %v1349_v0 }
 0x27d   : > { %745 = vmatpush1.msra.mxu1 %v614_v37 }
 0x27e   : > { %746 = vmatprep.subr.mxu1 %v1349_v0 }
 0x27f   : > { %747 = vmatpush1.msra.mxu1 %v613_v38 }
 0x280   : > { %748 = vmatprep.subr.mxu1 %v1349_v0 }
 0x281   : > { %749 = vmatpush1.msra.mxu1 %v612_v39 }
 0x282   : > { %750 = vmatprep.subr.mxu1 %v1349_v0 }
 0x283   : > { %751 = vmatpush1.msra.mxu1 %v611_v40 }
 0x284   : > { %772 = vmatprep.subr.mxu1 %v1349_v0 }
 0x285   : > { %773 = vmatpush2.msra.mxu1 %v632_v41 }
 0x286   : > { %774 = vmatprep.subr.mxu1 %v1349_v0 }
 0x287   : > { %775 = vmatpush2.msra.mxu1 %v631_v42 }
 0x288   : > { %776 = vmatprep.subr.mxu1 %v1349_v0 }
 0x289   : > { %777 = vmatpush2.msra.mxu1 %v630_v43 }
 0x28a   : > { %778 = vmatprep.subr.mxu1 %v1349_v0 }
 0x28b   : > { %779 = vmatpush2.msra.mxu1 %v629_v46 }
 0x28c   : > { %780 = vmatprep.subr.mxu1 %v1349_v0 }
 0x28d   : > { %781 = vmatpush2.msra.mxu1 %v628_v47 }
 0x28e   : > { %782 = vmatprep.subr.mxu1 %v1349_v0  ;;  %v810_v0 = vld [vmem:[#allocation2 + $0x68] sm:$0xff] }
 0x28f   : > { %783 = vmatpush2.msra.mxu1 %v627_v49 }
 0x290   : > { %785 = vmatmul.mubr.f32.vlgmr.msra.gmra.mxu1 %v577_v51  ;;  %1200 = vmatprep.subr.mxu1 %v812_v56 }
 0x291   : > { %1086 = vmatprep.mubr.msk.f32.mxu1 %vm640_vm9, %v572_v54  ;;  %1201 = vmatpush3.msra.mxu1 %v812_v56 }
 0x292   : > { %1202 = vmatprep.subr.mxu1 %v811_v57 }
 0x293   : > { %1203 = vmatpush3.msra.mxu1 %v811_v57 }
 0x294   : > { %790 = vmatmul.mubr.f32.gmra.mxu1 %v578_v55  ;;  %1204 = vmatprep.subr.mxu1 %v810_v0 }
 0x295   : > { %1205 = vmatpush3.msra.mxu1 %v810_v0 }
 0x296   : > { %1206 = vmatprep.subr.mxu1 %v809_v58 }
 0x297   : > { %1207 = vmatpush3.msra.mxu1 %v809_v58 }
 0x298   : > { %1208 = vmatprep.subr.mxu1 %v808_v59 }
 0x299   : > { %1209 = vmatpush3.msra.mxu1 %v808_v59 }
 0x29a   : > { %1210 = vmatprep.subr.mxu1 %v807_v60 }
 0x29b   : > { %1211 = vmatpush3.msra.mxu1 %v807_v60 }
 0x29c   : > { %1212 = vmatprep.subr.mxu1 %v806_v61 }
 0x29d   : > { %1213 = vmatpush3.msra.mxu1 %v806_v61 }
 0x29e   : > { %1214 = vmatprep.subr.mxu1 %v805_v62 }
 0x29f   : > { %1215 = vmatpush3.msra.mxu1 %v805_v62 }
 0x2a0   : > { %1216 = vmatprep.subr.mxu1 %v804_v63 }
 0x2a1   : > { %1217 = vmatpush3.msra.mxu1 %v804_v63 }
 0x2a2   : > { %1218 = vmatprep.subr.mxu1 %v803_v1 }
 0x2a3   : > { %1219 = vmatpush3.msra.mxu1 %v803_v1 }
 0x2a4   : > { %1220 = vmatprep.subr.mxu1 %v802_v2 }
 0x2a5   : > { %1221 = vmatpush3.msra.mxu1 %v802_v2 }
 0x2a6   : > { %1222 = vmatprep.subr.mxu1 %v801_v3 }
 0x2a7   : > { %1223 = vmatpush3.msra.mxu1 %v801_v3 }
 0x2a8   : > { %1224 = vmatprep.subr.mxu1 %v800_v4 }
 0x2a9   : > { %1225 = vmatpush3.msra.mxu1 %v800_v4 }
 0x2aa   : > { %1226 = vmatprep.subr.mxu1 %v799_v5 }
 0x2ab   : > { %1227 = vmatpush3.msra.mxu1 %v799_v5 }
 0x2ac   : > { %1228 = vmatprep.subr.mxu1 %v798_v6 }
 0x2ad   : > { %1229 = vmatpush3.msra.mxu1 %v798_v6 }
 0x2ae   : > { %1230 = vmatprep.subr.mxu1 %v797_v7 }
 0x2af   : > { %1231 = vmatpush3.msra.mxu1 %v797_v7 }
 0x324   : > { %v1123_v8 = vpop.f32.mrf.mxu1 }
 0x326   : > { %v1124_v9 = vpop.f32.mrf.mxu1 }
 0x327   : > { %v1125_v11 = vadd.f32 %v1124_v9, %v1123_v8 }
 0x328   : > { %v1126_v10 = vpop.f32.mrf.mxu1 }
 0x329   : > { %v712_v15 = vadd.f32 %v1125_v11, %v1082_v13 }
 0x32a   : > { %v1127_v12 = vpop.f32.mrf.mxu1 }
 0x32b   : > { %v1128_v14 = vadd.f32 %v1127_v12, %v1126_v10 }
 0x32d   : > { %v717_v20 = vadd.f32 %v1128_v14, %v1082_v13 }
 0x350   : > { %v786_v16 = vpop.f32.mrf.mxu1 }
 0x351   : > { %v787_v17 = vadd.f32 %v786_v16, %v712_v15 }
 0x352   : > { %v788_v18 = vpop.f32.mrf.mxu1 }
 0x353   : > { %v795_v19 = vmax.f32 %v787_v17, 0.0 }
 0x354   : > { %v791_v21 = vpop.f32.mrf.mxu1 }
 0x355   : > { %v792_v22 = vadd.f32 %v791_v21, %v717_v20  ;;  %1232 = vmatprep.mubr.f32.mxu1 %v795_v19 }
 0x356   : > { %v793_v23 = vpop.f32.mrf.mxu1 }
 0x357   : > { %v796_v24 = vmax.f32 %v792_v22, 0.0 }
 0x359   : > { %1233 = vmatmul.mubr.f32.vlgmr.msra.gmra.mxu1 %v796_v24 }
 0x419   : > { %v1234_v26 = vpop.f32.mrf.mxu1 }
 0x41a   : > { %v976_v28 = vadd.f32 %v1234_v26, %v1199_v25 }
 0x41b   : > { %v970_v30 = vpop.f32.mrf.mxu1 }
 0x41c   : > { %v987_v31 = vadd.f32 %v1087_v27, %v976_v28  ;;  %v971_v32 = vadd.f32 %v970_v30, %v895_v29 }
 0x41e   : > { %989 = vst [vmem:[%s335_s25 + $0x8] sm:$0xff] %v987_v31  ;;  %v986_v33 = vadd.f32 %v1087_v27, %v971_v32 }
 0x420   : > { %988 = vst [vmem:[%s335_s25] sm:$0xff] %v986_v33 }
 0x421 PF: > { %s20_s27 = sadd.s32 1, %s1343_s27  }
 0x422   : > { %p17_p2 = scmp.ge.s32.totalorder %s20_s27, 4  }
 0x424   :  { %19 = sbr.rel (!%p17_p2) target bundleno = 2 (0x2), region = 91 }
 0x429   :  { %1011 = vsyncpa [#allocation3], 1 }
 0x42a   :  { %1013 = vsyncpa [#allocation3 + $0x1], 1 }
 0x42b   :  { %1014 = vsyncpa [#allocation5], 1 }

</bundles_post_ra>
